<compile_context>
chip_gen: v7x
topology: tpu7x:2x2x1
jax: 0.10.0
libtpu: 0.0.40
codegen_flags: <defaults>
</compile_context>

<pallas_src>
import functools

import jax
import jax.numpy as jnp
from jax.experimental import pallas as pl
from jax.experimental.pallas import tpu as pltpu


# ----------------------------------------------------------------------------
# Kernel
# ----------------------------------------------------------------------------
def _fused_input_block_kernel(x_ref, sd_ref, su_ref,
                              w1_ref, b1_ref, a1_ref,
                              w2_ref, b2_ref, a2_ref,
                              o_ref):
    """One grid step = Nb batch images packed along the matmul M axis.

    x_ref  : (M, W*Ci)       M = Nb*H rows, channels fused into lanes
    sd_ref : (M, M)          row-shift-down matrix (row h-1, 0 at image tops)
    su_ref : (M, M)          row-shift-up   matrix (row h+1, 0 at image bottoms)
    w1_ref : (3, W*Ci, W*Co) banded conv1 weights (one band per ky tap)
    b1_ref, a1_ref : (1, W*Co)  f32 bias / PReLU slope tiled over fused lanes
    w2_ref : (3, W*Co, W*Co)
    b2_ref, a2_ref : (1, W*Co)
    o_ref  : (M, W*Co)       lane-dense output slab
    """
    cdt = x_ref.dtype

    def mm(a, b):
        return jnp.dot(a, b, preferred_element_type=jnp.float32)

    # ---- stage 1: conv1 + PReLU -------------------------------------------
    x = x_ref[...]
    # Row shifts for the ky=0 / ky=2 taps.  The per-image zero padding along H
    # and the image boundaries inside the packed block are folded into the
    # 0/1-valued shift matrices, so no padded scratch copy / unaligned access.
    x_dn = mm(sd_ref[...], x).astype(cdt)
    x_up = mm(su_ref[...], x).astype(cdt)
    acc = (mm(x_dn, w1_ref[0]) + mm(x, w1_ref[1]) + mm(x_up, w1_ref[2])
           + b1_ref[...])                                   # f32 accumulator
    y1 = jnp.where(acc >= 0.0, acc, a1_ref[...] * acc).astype(cdt)

    # ---- stage 2: conv2 + PReLU (intermediate never leaves VMEM/registers) -
    y1_dn = mm(sd_ref[...], y1).astype(cdt)
    y1_up = mm(su_ref[...], y1).astype(cdt)
    acc2 = (mm(y1_dn, w2_ref[0]) + mm(y1, w2_ref[1]) + mm(y1_up, w2_ref[2])
            + b2_ref[...])
    y2 = jnp.where(acc2 >= 0.0, acc2, a2_ref[...] * acc2)

    o_ref[...] = y2.astype(o_ref.dtype)


# ----------------------------------------------------------------------------
# Host-side helpers
# ----------------------------------------------------------------------------
def _band_weights(w, c_in, c_out, width):
    """(3, 3, Cin, Cout) HWIO conv weights -> (3, W*Cin, W*Cout) banded matrices.

    B[ky][w_in*Cin + ci, wi*Cout + co] = w[ky, kx, ci, co] with kx = w_in - wi + 1,
    zero elsewhere.  The kx taps and the zero padding along W are folded into
    the band structure, so the kernel only has to shift along H (ky).
    """
    bmat = jnp.zeros((3, width * c_in, width * c_out), w.dtype)
    for kx in range(3):
        for wi in range(width):
            w_in = wi + kx - 1
            if 0 <= w_in < width:
                bmat = bmat.at[:, w_in * c_in:(w_in + 1) * c_in,
                               wi * c_out:(wi + 1) * c_out].set(w[:, kx])
    return bmat


def _shift_matrices(n_imgs, h, dtype):
    """(M, M) 0/1 matrices with M = n_imgs*h:  (S_dn @ x)[r] = x[r-1] within the
    same image (0 at each image's first row), (S_up @ x)[r] = x[r+1] within the
    same image (0 at each image's last row)."""
    m = n_imgs * h
    r = jnp.arange(m)
    s_dn = jnp.where((r % h != 0)[:, None],
                     jnp.eye(m, k=-1, dtype=jnp.float32), 0.0)
    s_up = jnp.where((r % h != h - 1)[:, None],
                     jnp.eye(m, k=1, dtype=jnp.float32), 0.0)
    return s_dn.astype(dtype), s_up.astype(dtype)


def _pick_batch_pack(n, h, target_rows=256):
    """Largest divisor Nb of n with Nb*h <= target_rows (>= 1); keeps matmul M
    near the MXU depth while amortising per-grid-step overhead."""
    best = 1
    for nb in range(1, n + 1):
        if n % nb == 0 and nb * h <= target_rows:
            best = nb
    if (best * h) % 8 != 0:      # keep the block sublane-aligned; fall back to
        best = n                 # one block = whole batch (block == full dims)
    return best


# ----------------------------------------------------------------------------
# Forward pass
# ----------------------------------------------------------------------------
def input_block_forward(x_nchw, w1, b1, a1, w2, b2, a2,
                        compute_dtype=jnp.bfloat16, layout="NCHW"):
    """Fused InputBlock forward.  x_nchw: (N, Cin, H, W), PyTorch layout."""
    N, Ci, H, W = x_nchw.shape
    Co = w1.shape[-1]
    out_dtype = x_nchw.dtype

    Nb = _pick_batch_pack(N, H)          # images packed per grid step
    M = Nb * H                           # matmul rows per grid step
    G = N // Nb                          # grid steps

    # NCHW -> (N*H, W*Ci): channels fused into the lane axis (layout glue only).
    x_f = jnp.transpose(x_nchw, (0, 2, 3, 1)).reshape(N * H, W * Ci)
    x_f = x_f.astype(compute_dtype)

    w1b = _band_weights(w1, Ci, Co, W).astype(compute_dtype)
    w2b = _band_weights(w2, Co, Co, W).astype(compute_dtype)
    s_dn, s_up = _shift_matrices(Nb, H, compute_dtype)
    # Bias / PReLU slope tiled to the fused lane layout (lane = w*Co + co), f32.
    b1f = jnp.tile(b1.astype(jnp.float32), W).reshape(1, W * Co)
    a1f = jnp.tile(a1.astype(jnp.float32), W).reshape(1, W * Co)
    b2f = jnp.tile(b2.astype(jnp.float32), W).reshape(1, W * Co)
    a2f = jnp.tile(a2.astype(jnp.float32), W).reshape(1, W * Co)

    out = pl.pallas_call(
        _fused_input_block_kernel,
        out_shape=jax.ShapeDtypeStruct((N * H, W * Co), out_dtype),
        grid_spec=pltpu.PrefetchScalarGridSpec(
            num_scalar_prefetch=0,
            grid=(G,),
            in_specs=[
                pl.BlockSpec((M, W * Ci), lambda g: (g, 0)),
                pl.BlockSpec((M, M), lambda g: (0, 0)),
                pl.BlockSpec((M, M), lambda g: (0, 0)),
                pl.BlockSpec((3, W * Ci, W * Co), lambda g: (0, 0, 0)),
                pl.BlockSpec((1, W * Co), lambda g: (0, 0)),
                pl.BlockSpec((1, W * Co), lambda g: (0, 0)),
                pl.BlockSpec((3, W * Co, W * Co), lambda g: (0, 0, 0)),
                pl.BlockSpec((1, W * Co), lambda g: (0, 0)),
                pl.BlockSpec((1, W * Co), lambda g: (0, 0)),
            ],
            out_specs=pl.BlockSpec((M, W * Co), lambda g: (g, 0)),
        ),
        compiler_params=pltpu.CompilerParams(
            dimension_semantics=("parallel",),
            # Tiny footprint here; raise toward ~100 MiB on v5e/v6e (<=48 MiB
            # on v7x) only when growing tiles for larger images.
            vmem_limit_bytes=32 * 1024 * 1024,
        ),
    )(x_f, s_dn, s_up, w1b, b1f, a1f, w2b, b2f, a2f)

    if layout == "fused":
        return out                        # (N*H, W*Co), skips the NCHW transpose
    # (N*H, W*Co) -> NCHW to match the PyTorch module's contract.
    return jnp.transpose(out.reshape(N, H, W, Co), (0, 3, 1, 2))


_input_block_forward_jit = jax.jit(input_block_forward,
                                   static_argnames=("compute_dtype", "layout"))


class InputBlockPallas:
    """JAX/Pallas equivalent of the PyTorch InputBlock module."""

    def __init__(self, in_channels, out_channels, key):
        k1, k2, k3, k4 = jax.random.split(key, 4)
        fan1 = in_channels * 9
        fan2 = out_channels * 9
        s1 = 1.0 / jnp.sqrt(fan1)
        s2 = 1.0 / jnp.sqrt(fan2)
        # Weights stored HWIO: (kh, kw, Cin, Cout).
        self.w1 = jax.random.uniform(k1, (3, 3, in_channels, out_channels),
                                     jnp.float32, -s1, s1)
        self.b1 = jax.random.uniform(k2, (out_channels,), jnp.float32, -s1, s1)
        self.w2 = jax.random.uniform(k3, (3, 3, out_channels, out_channels),
                                     jnp.float32, -s2, s2)
        self.b2 = jax.random.uniform(k4, (out_channels,), jnp.float32, -s2, s2)
        # PReLU default init = 0.25 per channel.
        self.a1 = jnp.full((out_channels,), 0.25, jnp.float32)
        self.a2 = jnp.full((out_channels,), 0.25, jnp.float32)

    def __call__(self, x_nchw, compute_dtype=jnp.bfloat16):
        return _input_block_forward_jit(x_nchw, self.w1, self.b1, self.a1,
                                        self.w2, self.b2, self.a2,
                                        compute_dtype=compute_dtype)


def _reference(x_nchw, blk):
    """Pure-JAX reference (lax conv, f32) for correctness checking."""
    def conv(x, w, b, a):
        w_oihw = jnp.transpose(w, (3, 2, 0, 1))       # HWIO -> OIHW
        y = jax.lax.conv_general_dilated(
            x, w_oihw, window_strides=(1, 1), padding="SAME",
            dimension_numbers=("NCHW", "OIHW", "NCHW"))
        y = y + b[None, :, None, None]
        return jnp.where(y >= 0, y, a[None, :, None, None] * y)

    y = conv(x_nchw, blk.w1, blk.b1, blk.a1)
    return conv(y, blk.w2, blk.b2, blk.a2)


if __name__ == "__main__":
    key = jax.random.PRNGKey(0)
    kx_, kp = jax.random.split(key)

    N, Cin, H, W = 2, 4, 16, 16
    Cout = 8

    x = jax.random.normal(kx_, (N, Cin, H, W), jnp.float32)
    block = InputBlockPallas(Cin, Cout, kp)

    # Default bf16-MXU path and exact f32 path.
    out_bf16 = jax.block_until_ready(block(x))
    out_f32 = jax.block_until_ready(block(x, compute_dtype=jnp.float32))

    ref = _reference(x, block)
    assert out_bf16.shape == (N, Cout, H, W)
    assert jnp.allclose(out_f32, ref, atol=1e-4, rtol=1e-4), \
        "f32 mismatch vs reference"
    assert jnp.allclose(out_bf16, ref, atol=7.5e-2, rtol=7.5e-2), \
        "bf16 mismatch vs reference"

    print("KERNEL_OK")
</pallas_src>

<mosaic_0001>
module attributes {stable_mosaic.version = 11 : i64} {
  func.func @_fused_input_block_kernel(%arg0: i32, %arg1: memref<32x64xbf16, #tpu.memory_space<vmem>>, %arg2: memref<32x32xbf16, #tpu.memory_space<vmem>>, %arg3: memref<32x32xbf16, #tpu.memory_space<vmem>>, %arg4: memref<3x64x128xbf16, #tpu.memory_space<vmem>>, %arg5: memref<1x128xf32, #tpu.memory_space<vmem>>, %arg6: memref<1x128xf32, #tpu.memory_space<vmem>>, %arg7: memref<3x128x128xbf16, #tpu.memory_space<vmem>>, %arg8: memref<1x128xf32, #tpu.memory_space<vmem>>, %arg9: memref<1x128xf32, #tpu.memory_space<vmem>>, %arg10: memref<32x128xf32, #tpu.memory_space<vmem>>) attributes {dimension_semantics = [#tpu.dimension_semantics<parallel>], iteration_bounds = array<i64: 1>, scalar_prefetch = 0 : i64, scratch_operands = 0 : i64, tpu.core_type = #tpu.core_type<tc>, window_params = [{transform_indices = @transform_0, window_bounds = array<i64: 32, 64>}, {pipeline_mode = #tpu.pipeline_mode<synchronous>, transform_indices = @transform_1, window_bounds = array<i64: 32, 32>}, {pipeline_mode = #tpu.pipeline_mode<synchronous>, transform_indices = @transform_2, window_bounds = array<i64: 32, 32>}, {pipeline_mode = #tpu.pipeline_mode<synchronous>, transform_indices = @transform_3, window_bounds = array<i64: 3, 64, 128>}, {pipeline_mode = #tpu.pipeline_mode<synchronous>, transform_indices = @transform_4, window_bounds = array<i64: 1, 128>}, {pipeline_mode = #tpu.pipeline_mode<synchronous>, transform_indices = @transform_5, window_bounds = array<i64: 1, 128>}, {pipeline_mode = #tpu.pipeline_mode<synchronous>, transform_indices = @transform_6, window_bounds = array<i64: 3, 128, 128>}, {pipeline_mode = #tpu.pipeline_mode<synchronous>, transform_indices = @transform_7, window_bounds = array<i64: 1, 128>}, {pipeline_mode = #tpu.pipeline_mode<synchronous>, transform_indices = @transform_8, window_bounds = array<i64: 1, 128>}, {transform_indices = @transform_9, window_bounds = array<i64: 32, 128>}]} {
    %c0 = arith.constant 0 : index
    %c0_0 = arith.constant 0 : index
    %0 = vector.load %arg1[%c0, %c0_0] : memref<32x64xbf16, #tpu.memory_space<vmem>>, vector<32x64xbf16>
    %c0_1 = arith.constant 0 : index
    %c0_2 = arith.constant 0 : index
    %1 = vector.load %arg2[%c0_1, %c0_2] : memref<32x32xbf16, #tpu.memory_space<vmem>>, vector<32x32xbf16>
    %cst = arith.constant dense<0.000000e+00> : vector<32x64xf32>
    %2 = tpu.matmul %1, %0, %cst {dimension_numbers = #tpu.dot_dimension_numbers<[1], [0], [0], [1], [0, 0, 1, 1], [], []>} : vector<32x32xbf16>, vector<32x64xbf16>, vector<32x64xf32> -> vector<32x64xf32>
    %3 = arith.truncf %2 : vector<32x64xf32> to vector<32x64xbf16>
    %c0_3 = arith.constant 0 : index
    %c0_4 = arith.constant 0 : index
    %4 = vector.load %arg3[%c0_3, %c0_4] : memref<32x32xbf16, #tpu.memory_space<vmem>>, vector<32x32xbf16>
    %cst_5 = arith.constant dense<0.000000e+00> : vector<32x64xf32>
    %5 = tpu.matmul %4, %0, %cst_5 {dimension_numbers = #tpu.dot_dimension_numbers<[1], [0], [0], [1], [0, 0, 1, 1], [], []>} : vector<32x32xbf16>, vector<32x64xbf16>, vector<32x64xf32> -> vector<32x64xf32>
    %6 = arith.truncf %5 : vector<32x64xf32> to vector<32x64xbf16>
    %c0_6 = arith.constant 0 : index
    %c0_7 = arith.constant 0 : index
    %c0_8 = arith.constant 0 : index
    %7 = vector.load %arg4[%c0_6, %c0_7, %c0_8] : memref<3x64x128xbf16, #tpu.memory_space<vmem>>, vector<1x64x128xbf16>
    %8 = vector.shape_cast %7 : vector<1x64x128xbf16> to vector<64x128xbf16>
    %cst_9 = arith.constant dense<0.000000e+00> : vector<32x128xf32>
    %9 = tpu.matmul %3, %8, %cst_9 {dimension_numbers = #tpu.dot_dimension_numbers<[1], [0], [0], [1], [0, 0, 1, 1], [], []>} : vector<32x64xbf16>, vector<64x128xbf16>, vector<32x128xf32> -> vector<32x128xf32>
    %c1 = arith.constant 1 : index
    %c0_10 = arith.constant 0 : index
    %c0_11 = arith.constant 0 : index
    %10 = vector.load %arg4[%c1, %c0_10, %c0_11] : memref<3x64x128xbf16, #tpu.memory_space<vmem>>, vector<1x64x128xbf16>
    %11 = vector.shape_cast %10 : vector<1x64x128xbf16> to vector<64x128xbf16>
    %cst_12 = arith.constant dense<0.000000e+00> : vector<32x128xf32>
    %12 = tpu.matmul %0, %11, %cst_12 {dimension_numbers = #tpu.dot_dimension_numbers<[1], [0], [0], [1], [0, 0, 1, 1], [], []>} : vector<32x64xbf16>, vector<64x128xbf16>, vector<32x128xf32> -> vector<32x128xf32>
    %13 = arith.addf %9, %12 : vector<32x128xf32>
    %c2 = arith.constant 2 : index
    %c0_13 = arith.constant 0 : index
    %c0_14 = arith.constant 0 : index
    %14 = vector.load %arg4[%c2, %c0_13, %c0_14] : memref<3x64x128xbf16, #tpu.memory_space<vmem>>, vector<1x64x128xbf16>
    %15 = vector.shape_cast %14 : vector<1x64x128xbf16> to vector<64x128xbf16>
    %cst_15 = arith.constant dense<0.000000e+00> : vector<32x128xf32>
    %16 = tpu.matmul %6, %15, %cst_15 {dimension_numbers = #tpu.dot_dimension_numbers<[1], [0], [0], [1], [0, 0, 1, 1], [], []>} : vector<32x64xbf16>, vector<64x128xbf16>, vector<32x128xf32> -> vector<32x128xf32>
    %17 = arith.addf %13, %16 : vector<32x128xf32>
    %c0_16 = arith.constant 0 : index
    %c0_17 = arith.constant 0 : index
    %18 = vector.load %arg5[%c0_16, %c0_17] : memref<1x128xf32, #tpu.memory_space<vmem>>, vector<1x128xf32>
    %19 = vector.broadcast %18 : vector<1x128xf32> to vector<32x128xf32>
    %20 = arith.addf %17, %19 : vector<32x128xf32>
    %cst_18 = arith.constant 0.000000e+00 : f32
    %21 = vector.broadcast %cst_18 : f32 to vector<32x128xf32>
    %22 = arith.cmpf oge, %20, %21 : vector<32x128xf32>
    %c0_19 = arith.constant 0 : index
    %c0_20 = arith.constant 0 : index
    %23 = vector.load %arg6[%c0_19, %c0_20] : memref<1x128xf32, #tpu.memory_space<vmem>>, vector<1x128xf32>
    %24 = vector.broadcast %23 : vector<1x128xf32> to vector<32x128xf32>
    %25 = arith.mulf %24, %20 : vector<32x128xf32>
    %26 = arith.select %22, %20, %25 : vector<32x128xi1>, vector<32x128xf32>
    %27 = arith.truncf %26 : vector<32x128xf32> to vector<32x128xbf16>
    %c0_21 = arith.constant 0 : index
    %c0_22 = arith.constant 0 : index
    %28 = vector.load %arg2[%c0_21, %c0_22] : memref<32x32xbf16, #tpu.memory_space<vmem>>, vector<32x32xbf16>
    %cst_23 = arith.constant dense<0.000000e+00> : vector<32x128xf32>
    %29 = tpu.matmul %28, %27, %cst_23 {dimension_numbers = #tpu.dot_dimension_numbers<[1], [0], [0], [1], [0, 0, 1, 1], [], []>} : vector<32x32xbf16>, vector<32x128xbf16>, vector<32x128xf32> -> vector<32x128xf32>
    %30 = arith.truncf %29 : vector<32x128xf32> to vector<32x128xbf16>
    %c0_24 = arith.constant 0 : index
    %c0_25 = arith.constant 0 : index
    %31 = vector.load %arg3[%c0_24, %c0_25] : memref<32x32xbf16, #tpu.memory_space<vmem>>, vector<32x32xbf16>
    %cst_26 = arith.constant dense<0.000000e+00> : vector<32x128xf32>
    %32 = tpu.matmul %31, %27, %cst_26 {dimension_numbers = #tpu.dot_dimension_numbers<[1], [0], [0], [1], [0, 0, 1, 1], [], []>} : vector<32x32xbf16>, vector<32x128xbf16>, vector<32x128xf32> -> vector<32x128xf32>
    %33 = arith.truncf %32 : vector<32x128xf32> to vector<32x128xbf16>
    %c0_27 = arith.constant 0 : index
    %c0_28 = arith.constant 0 : index
    %c0_29 = arith.constant 0 : index
    %34 = vector.load %arg7[%c0_27, %c0_28, %c0_29] : memref<3x128x128xbf16, #tpu.memory_space<vmem>>, vector<1x128x128xbf16>
    %35 = vector.shape_cast %34 : vector<1x128x128xbf16> to vector<128x128xbf16>
    %cst_30 = arith.constant dense<0.000000e+00> : vector<32x128xf32>
    %36 = tpu.matmul %30, %35, %cst_30 {dimension_numbers = #tpu.dot_dimension_numbers<[1], [0], [0], [1], [0, 0, 1, 1], [], []>} : vector<32x128xbf16>, vector<128x128xbf16>, vector<32x128xf32> -> vector<32x128xf32>
    %c1_31 = arith.constant 1 : index
    %c0_32 = arith.constant 0 : index
    %c0_33 = arith.constant 0 : index
    %37 = vector.load %arg7[%c1_31, %c0_32, %c0_33] : memref<3x128x128xbf16, #tpu.memory_space<vmem>>, vector<1x128x128xbf16>
    %38 = vector.shape_cast %37 : vector<1x128x128xbf16> to vector<128x128xbf16>
    %cst_34 = arith.constant dense<0.000000e+00> : vector<32x128xf32>
    %39 = tpu.matmul %27, %38, %cst_34 {dimension_numbers = #tpu.dot_dimension_numbers<[1], [0], [0], [1], [0, 0, 1, 1], [], []>} : vector<32x128xbf16>, vector<128x128xbf16>, vector<32x128xf32> -> vector<32x128xf32>
    %40 = arith.addf %36, %39 : vector<32x128xf32>
    %c2_35 = arith.constant 2 : index
    %c0_36 = arith.constant 0 : index
    %c0_37 = arith.constant 0 : index
    %41 = vector.load %arg7[%c2_35, %c0_36, %c0_37] : memref<3x128x128xbf16, #tpu.memory_space<vmem>>, vector<1x128x128xbf16>
    %42 = vector.shape_cast %41 : vector<1x128x128xbf16> to vector<128x128xbf16>
    %cst_38 = arith.constant dense<0.000000e+00> : vector<32x128xf32>
    %43 = tpu.matmul %33, %42, %cst_38 {dimension_numbers = #tpu.dot_dimension_numbers<[1], [0], [0], [1], [0, 0, 1, 1], [], []>} : vector<32x128xbf16>, vector<128x128xbf16>, vector<32x128xf32> -> vector<32x128xf32>
    %44 = arith.addf %40, %43 : vector<32x128xf32>
    %c0_39 = arith.constant 0 : index
    %c0_40 = arith.constant 0 : index
    %45 = vector.load %arg8[%c0_39, %c0_40] : memref<1x128xf32, #tpu.memory_space<vmem>>, vector<1x128xf32>
    %46 = vector.broadcast %45 : vector<1x128xf32> to vector<32x128xf32>
    %47 = arith.addf %44, %46 : vector<32x128xf32>
    %cst_41 = arith.constant 0.000000e+00 : f32
    %48 = vector.broadcast %cst_41 : f32 to vector<32x128xf32>
    %49 = arith.cmpf oge, %47, %48 : vector<32x128xf32>
    %c0_42 = arith.constant 0 : index
    %c0_43 = arith.constant 0 : index
    %50 = vector.load %arg9[%c0_42, %c0_43] : memref<1x128xf32, #tpu.memory_space<vmem>>, vector<1x128xf32>
    %51 = vector.broadcast %50 : vector<1x128xf32> to vector<32x128xf32>
    %52 = arith.mulf %51, %47 : vector<32x128xf32>
    %53 = arith.select %49, %47, %52 : vector<32x128xi1>, vector<32x128xf32>
    %c0_44 = arith.constant 0 : index
    %c0_45 = arith.constant 0 : index
    %54 = vector.load %arg10[%c0_44, %c0_45] : memref<32x128xf32, #tpu.memory_space<vmem>>, vector<32x128xf32>
    tpu.vector_store %arg10[%c0_44, %c0_45], %53 {strides = array<i32>} : memref<32x128xf32, #tpu.memory_space<vmem>>, vector<32x128xf32>,
    return
  }
  func.func @transform_0(%arg0: i32) -> (i32, i32) {
    %c0_i32 = arith.constant 0 : i32
    %c0_i32_0 = arith.constant 0 : i32
    return %arg0, %c0_i32 : i32, i32
  }
  func.func @transform_1(%arg0: i32) -> (i32, i32) {
    %c0_i32 = arith.constant 0 : i32
    %c0_i32_0 = arith.constant 0 : i32
    %c0_i32_1 = arith.constant 0 : i32
    return %c0_i32, %c0_i32_0 : i32, i32
  }
  func.func @transform_2(%arg0: i32) -> (i32, i32) {
    %c0_i32 = arith.constant 0 : i32
    %c0_i32_0 = arith.constant 0 : i32
    %c0_i32_1 = arith.constant 0 : i32
    return %c0_i32, %c0_i32_0 : i32, i32
  }
  func.func @transform_3(%arg0: i32) -> (i32, i32, i32) {
    %c0_i32 = arith.constant 0 : i32
    %c0_i32_0 = arith.constant 0 : i32
    %c0_i32_1 = arith.constant 0 : i32
    %c0_i32_2 = arith.constant 0 : i32
    return %c0_i32, %c0_i32_0, %c0_i32_1 : i32, i32, i32
  }
  func.func @transform_4(%arg0: i32) -> (i32, i32) {
    %c0_i32 = arith.constant 0 : i32
    %c0_i32_0 = arith.constant 0 : i32
    %c0_i32_1 = arith.constant 0 : i32
    return %c0_i32, %c0_i32_0 : i32, i32
  }
  func.func @transform_5(%arg0: i32) -> (i32, i32) {
    %c0_i32 = arith.constant 0 : i32
    %c0_i32_0 = arith.constant 0 : i32
    %c0_i32_1 = arith.constant 0 : i32
    return %c0_i32, %c0_i32_0 : i32, i32
  }
  func.func @transform_6(%arg0: i32) -> (i32, i32, i32) {
    %c0_i32 = arith.constant 0 : i32
    %c0_i32_0 = arith.constant 0 : i32
    %c0_i32_1 = arith.constant 0 : i32
    %c0_i32_2 = arith.constant 0 : i32
    return %c0_i32, %c0_i32_0, %c0_i32_1 : i32, i32, i32
  }
  func.func @transform_7(%arg0: i32) -> (i32, i32) {
    %c0_i32 = arith.constant 0 : i32
    %c0_i32_0 = arith.constant 0 : i32
    %c0_i32_1 = arith.constant 0 : i32
    return %c0_i32, %c0_i32_0 : i32, i32
  }
  func.func @transform_8(%arg0: i32) -> (i32, i32) {
    %c0_i32 = arith.constant 0 : i32
    %c0_i32_0 = arith.constant 0 : i32
    %c0_i32_1 = arith.constant 0 : i32
    return %c0_i32, %c0_i32_0 : i32, i32
  }
  func.func @transform_9(%arg0: i32) -> (i32, i32) {
    %c0_i32 = arith.constant 0 : i32
    %c0_i32_0 = arith.constant 0 : i32
    return %arg0, %c0_i32 : i32, i32
  }
}

</mosaic_0001>

<bundles_post_ra>
// kernel: tile.23
= control target key start
LH: loop header
LB: loop body
LE: loop exit
PB: predicated region body
PF: predicated region fallthrough
CT: control target
= control target key end

     0   :  { %s28_s0 = inlined_call_operand.vmem [shape: f32[8], index: 0, kind: input, shape index: {}]   ;;  %s29_s1 = inlined_call_operand.vmem [shape: f32[16,8], index: 1, kind: output, shape index: {}]  }
   0x1   :  { %v4_v0 = vld [vmem:[%s28_s0] ss:$0 sm:$0xff] }
   0x2   :  { %5 = vst [vmem:[%s29_s1] sm:$0xff] %v4_v0  ;;  %8 = vst [vmem:[%s29_s1 + $0x8] sm:$0xff] %v4_v0 }

// kernel: tile.24
= control target key start
LH: loop header
LB: loop body
LE: loop exit
PB: predicated region body
PF: predicated region fallthrough
CT: control target
= control target key end

     0   :  { %s131_s10 = smov 120   ;;  %s132_s11 = smov 104   ;;  %vm3_vm0 = vcmask 64512   ;;  %vm9_vm1 = vcmask 1048512   ;;  %vm15_vm2 = vcmask 982912   ;;  %vm21_vm3 = vcmask 917312   ;;  %s207_s0 = inlined_call_operand.vmem [shape: f32[16,8], index: 0, kind: input, shape index: {}]   ;;  %s208_s1 = inlined_call_operand.vmem [shape: f32[1,128], index: 1, kind: output, shape index: {}]  }
   0x1   :  { %v101_v0 = vld [vmem:[%s207_s0 + $0xf] sm:$0x1]   ;;  %v103_v1 = vld [vmem:[%s207_s0 + $0xd] sm:$0x1]   ;;  %v102_v2 = vld [vmem:[%s207_s0 + $0xe] sm:$0x1]  }
   0x2   :  { %7 = vrot.lane.b32.xlu0 %v101_v0, %s131_s10  ;;  %19 = vrot.lane.b32.xlu1 %v103_v1, %s132_s11  ;;  %v104_v3 = vld [vmem:[%s207_s0 + $0xc] sm:$0x1]   ;;  %s133_s16 = smov 112   ;;  %s134_s17 = smov 96   ;;  %v105_v4 = vld [vmem:[%s207_s0 + $0xb] sm:$0x1]  }
   0x3   :  { %v106_v5 = vld [vmem:[%s207_s0 + $0xa] sm:$0x1]   ;;  %v2_v6 = vld [vmem:[%s207_s0] sm:$0x1]   ;;  %s135_s24 = smov 88   ;;  %s136_s25 = smov 80  }
   0x4   :  { %4 = vst.msk [vmem:[#allocation0] sm:$0x1] %vm3_vm0, %v2_v6   ;;  %v107_v7 = vld [vmem:[%s207_s0 + $0x9] sm:$0x1]   ;;  %v108_v8 = vld [vmem:[%s207_s0 + $0x8] sm:$0x1]  }
   0x5   :  { %s137_s30 = smov 72   ;;  %s138_s2 = smov 64   ;;  %v109_v9 = vld [vmem:[%s207_s0 + $0x7] sm:$0x1]   ;;  %v110_v10 = vld [vmem:[%s207_s0 + $0x6] sm:$0x1]  }
   0x6   :  { %13 = vrot.lane.b32.xlu0 %v102_v2, %s133_s16  ;;  %25 = vrot.lane.b32.xlu1 %v104_v3, %s134_s17  ;;  %s139_s7 = smov 56   ;;  %s140_s8 = smov 48   ;;  %v111_v11 = vld [vmem:[%s207_s0 + $0x5] sm:$0x1]   ;;  %v112_v12 = vld [vmem:[%s207_s0 + $0x4] sm:$0x1]  }
   0x7   :  { %s141_s13 = smov 40   ;;  %s142_s14 = smov 32   ;;  %v113_v13 = vld [vmem:[%s207_s0 + $0x3] sm:$0x1]   ;;  %v114_v14 = vld [vmem:[%s207_s0 + $0x2] sm:$0x1]  }
   0x8   :  { %s143_s19 = smov 24   ;;  %s144_s20 = smov 16   ;;  %v115_v15 = vld [vmem:[%s207_s0 + $0x1] sm:$0x1]   ;;  %vm27_vm4 = vcmask 851712   ;;  %vm33_vm5 = vcmask 786112  }
   0x9   :  { %s145_s0 = smov 8   ;;  %vm39_vm6 = vcmask 720512   ;;  %vm45_vm7 = vcmask 654912   ;;  %vm51_vm8 = vcmask 589312   ;;  %vm57_vm9 = vcmask 523712  }
   0xa   :  { %31 = vrot.lane.b32.xlu0 %v105_v4, %s135_s24  ;;  %37 = vrot.lane.b32.xlu1 %v106_v5, %s136_s25  ;;  %vm63_vm10 = vcmask 458112   ;;  %vm69_vm11 = vcmask 392512   ;;  %vm75_vm12 = vcmask 326912   ;;  %vm81_vm13 = vcmask 261312  }
   0xb   :  { %vm87_vm14 = vcmask 195712   ;;  %vm93_vm15 = vcmask 130112  }
   0xe   :  { %43 = vrot.lane.b32.xlu0 %v107_v7, %s137_s30  ;;  %49 = vrot.lane.b32.xlu1 %v108_v8, %s138_s2 }
  0x12   :  { %55 = vrot.lane.b32.xlu0 %v109_v9, %s139_s7  ;;  %61 = vrot.lane.b32.xlu1 %v110_v10, %s140_s8 }
  0x16   :  { %67 = vrot.lane.b32.xlu0 %v111_v11, %s141_s13  ;;  %73 = vrot.lane.b32.xlu1 %v112_v12, %s142_s14 }
  0x1a   :  { %79 = vrot.lane.b32.xlu0 %v113_v13, %s143_s19  ;;  %85 = vrot.lane.b32.xlu1 %v114_v14, %s144_s20 }
  0x1e   :  { %91 = vrot.lane.b32.xlu0 %v115_v15, %s145_s0 }
  0x74   :  { %v8_v16 = vpop.permute.xlu0 %7   ;;  %v20_v17 = vpop.permute.xlu1 %19  }
  0x75   :  { %10 = vst.msk [vmem:[#allocation0] sm:$0x1] %vm9_vm1, %v8_v16  }
  0x78   :  { %v14_v18 = vpop.permute.xlu0 %13   ;;  %v26_v19 = vpop.permute.xlu1 %25  }
  0x79   :  { %16 = vst.msk [vmem:[#allocation0] sm:$0x1] %vm15_vm2, %v14_v18  }
  0x7a   :  { %22 = vst.msk [vmem:[#allocation0] sm:$0x1] %vm21_vm3, %v20_v17  }
  0x7b   :  { %28 = vst.msk [vmem:[#allocation0] sm:$0x1] %vm27_vm4, %v26_v19  }
  0x7c   :  { %v32_v20 = vpop.permute.xlu0 %31   ;;  %v38_v21 = vpop.permute.xlu1 %37  }
  0x7d   :  { %34 = vst.msk [vmem:[#allocation0] sm:$0x1] %vm33_vm5, %v32_v20  }
  0x7e   :  { %40 = vst.msk [vmem:[#allocation0] sm:$0x1] %vm39_vm6, %v38_v21  }
  0x80   :  { %v44_v22 = vpop.permute.xlu0 %43   ;;  %v50_v23 = vpop.permute.xlu1 %49  }
  0x81   :  { %46 = vst.msk [vmem:[#allocation0] sm:$0x1] %vm45_vm7, %v44_v22  }
  0x82   :  { %52 = vst.msk [vmem:[#allocation0] sm:$0x1] %vm51_vm8, %v50_v23  }
  0x84   :  { %v56_v24 = vpop.permute.xlu0 %55   ;;  %v62_v25 = vpop.permute.xlu1 %61  }
  0x85   :  { %58 = vst.msk [vmem:[#allocation0] sm:$0x1] %vm57_vm9, %v56_v24  }
  0x86   :  { %64 = vst.msk [vmem:[#allocation0] sm:$0x1] %vm63_vm10, %v62_v25  }
  0x88   :  { %v68_v26 = vpop.permute.xlu0 %67   ;;  %v74_v27 = vpop.permute.xlu1 %73  }
  0x89   :  { %70 = vst.msk [vmem:[#allocation0] sm:$0x1] %vm69_vm11, %v68_v26  }
  0x8a   :  { %76 = vst.msk [vmem:[#allocation0] sm:$0x1] %vm75_vm12, %v74_v27  }
  0x8c   :  { %v80_v28 = vpop.permute.xlu0 %79   ;;  %v86_v29 = vpop.permute.xlu1 %85  }
  0x8d   :  { %82 = vst.msk [vmem:[#allocation0] sm:$0x1] %vm81_vm13, %v80_v28  }
  0x8e   :  { %88 = vst.msk [vmem:[#allocation0] sm:$0x1] %vm87_vm14, %v86_v29  }
  0x90   :  { %v92_v30 = vpop.permute.xlu0 %91  }
  0x91   :  { %94 = vst.msk [vmem:[#allocation0] sm:$0x1] %vm93_vm15, %v92_v30  }
  0x98   :  { %v98_v31 = vld [vmem:[#allocation0] sm:$0x1] }
  0x99   :  { %100 = vst [vmem:[%s208_s1] sm:$0x1] %v98_v31 }

// kernel: input_block_forward.1
= control target key start
LH: loop header
LB: loop body
LE: loop exit
PB: predicated region body
PF: predicated region fallthrough
CT: control target
= control target key end

     0   :  { %vm63_vm0 = vcmask 261120   ;;  %vm233_vm1 = vcmask 523264   ;;  %s1561_s0 = inlined_call_operand.vmem [shape: bf16[32,64], index: 0, kind: input, shape index: {}]   ;;  %s1562_s1 = inlined_call_operand.vmem [shape: bf16[32,32], index: 1, kind: input, shape index: {}]   ;;  %s1563_s2 = inlined_call_operand.vmem [shape: bf16[32,32], index: 2, kind: input, shape index: {}]   ;;  %s1564_s3 = inlined_call_operand.vmem [shape: bf16[3,64,128], index: 3, kind: input, shape index: {}]   ;;  %s1565_s6 = inlined_call_operand.vmem [shape: bf16[3,128,128], index: 6, kind: input, shape index: {}]   ;;  %s1566_s4 = inlined_call_operand.vmem [shape: f32[1,128], index: 4, kind: input, shape index: {}]   ;;  %s1567_s5 = inlined_call_operand.vmem [shape: f32[1,128], index: 5, kind: input, shape index: {}]   ;;  %s1568_s7 = inlined_call_operand.vmem [shape: f32[1,128], index: 7, kind: input, shape index: {}]   ;;  %s1569_s8 = inlined_call_operand.vmem [shape: f32[1,128], index: 8, kind: input, shape index: {}]   ;;  %s1570_s9 = inlined_call_operand.vmem [shape: f32[32,128], index: 9, kind: output, shape index: {}]  }
   0x1   :  { %v1293_v0 = vld [vmem:[%s1561_s0] sm:$0xff]   ;;  %v1294_v1 = vld [vmem:[%s1561_s0 + $0x8] sm:$0xff]   ;;  %v1301_v8 = vld [vmem:[%s1564_s3 + $0x30] sm:$0xff]  }
   0x2   :  { %1149 = vmatprep.subr.bf16.mxu0 %v1293_v0  ;;  %v1295_v2 = vld [vmem:[%s1562_s1] sm:$0xff]   ;;  %1157 = vmatprep.subr.bf16.mxu1 %v1293_v0  ;;  %v1398_v3 = vld [vmem:[%s1562_s1 + $0x8] sm:$0xff]   ;;  %v1302_v9 = vld [vmem:[%s1564_s3 + $0x38] sm:$0xff]  }
   0x3   :  { %1150 = vmatpush3.bf16.msra.mxu0 %v1293_v0  ;;  %1158 = vmatpush3.bf16.msra.mxu1 %v1293_v0  ;;  %v1403_v4 = vld [vmem:[%s1563_s2] sm:$0xff]   ;;  %v1408_v5 = vld [vmem:[%s1563_s2 + $0x8] sm:$0xff]   ;;  %v1305_v12 = vld [vmem:[%s1564_s3 + $0x10] sm:$0xff]  }
   0x4   :  { %1151 = vmatprep.subr.bf16.mxu0 %v1294_v1  ;;  %1153 = vmatprep.mubr.msk.bf16.mxu0 %vm63_vm0, %v1295_v2  ;;  %v1299_v6 = vld [vmem:[%s1564_s3 + $0x20] sm:$0xff]   ;;  %v1300_v7 = vld [vmem:[%s1564_s3 + $0x28] sm:$0xff]   ;;  %v1306_v13 = vld [vmem:[%s1564_s3 + $0x18] sm:$0xff]  }
   0x5   :  { %1159 = vmatprep.subr.bf16.mxu1 %v1294_v1  ;;  %1161 = vmatprep.mubr.msk.bf16.mxu1 %vm63_vm0, %v1403_v4  ;;  %v1303_v10 = vld [vmem:[%s1564_s3] sm:$0xff]   ;;  %v1304_v11 = vld [vmem:[%s1564_s3 + $0x8] sm:$0xff]   ;;  %v1309_v28 = vld [vmem:[%s1564_s3 + $0x50] sm:$0xff]  }
   0x6   :  { %v1307_v14 = vld [vmem:[%s1564_s3 + $0x40] sm:$0xff]   ;;  %v1308_v27 = vld [vmem:[%s1564_s3 + $0x48] sm:$0xff]   ;;  %v1310_v29 = vld [vmem:[%s1564_s3 + $0x58] sm:$0xff]  }
   0x7   :  { %1152 = vmatpush3.bf16.msra.mxu0 %v1294_v1  ;;  %1160 = vmatpush3.bf16.msra.mxu1 %v1294_v1  ;;  %v1311_v30 = vld [vmem:[%s1565_s6 + $0x40] sm:$0xff]   ;;  %v1312_v31 = vld [vmem:[%s1565_s6 + $0x48] sm:$0xff]   ;;  %v1313_v32 = vld [vmem:[%s1565_s6 + $0x50] sm:$0xff]  }
   0x8   :  { %1165 = vmatprep.subr.bf16.mxu0 %v1299_v6  ;;  %v1314_v33 = vld [vmem:[%s1565_s6 + $0x58] sm:$0xff]   ;;  %v1315_v34 = vld [vmem:[%s1565_s6 + $0x60] sm:$0xff]   ;;  %v1316_v35 = vld [vmem:[%s1565_s6 + $0x68] sm:$0xff]  }
   0x9   :  { %v1317_v36 = vld [vmem:[%s1565_s6 + $0x70] sm:$0xff]   ;;  %v1318_v37 = vld [vmem:[%s1565_s6 + $0x78] sm:$0xff]   ;;  %v1021_v38 = vld [vmem:[%s1566_s4] ss:$0 sm:$0xff] }
   0xa   :  { %1154 = vmatmul.mubr.msk.bf16.vlgmr.msra.gmra.mrb[0].mxu0 %vm63_vm0, %v1398_v3  ;;  %1162 = vmatmul.mubr.msk.bf16.vlgmr.msra.gmra.mrb[0].mxu1 %vm63_vm0, %v1408_v5  ;;  %v1022_v40 = vld [vmem:[%s1567_s5] ss:$0 sm:$0xff]  ;;  %v1320_v59 = vld [vmem:[%s1565_s6 + $0x8] sm:$0xff]   ;;  %v1321_v60 = vld [vmem:[%s1565_s6 + $0x10] sm:$0xff]  }
   0xb   :  { %1166 = vmatpush3.bf16.msra.mxu0 %v1299_v6  ;;  %1173 = vmatprep.mubr.msk.bf16.mxu0 %vm233_vm1, %v1293_v0  ;;  %v1319_v58 = vld [vmem:[%s1565_s6] sm:$0xff]   ;;  %v1322_v61 = vld [vmem:[%s1565_s6 + $0x18] sm:$0xff]   ;;  %v1324_v63 = vld [vmem:[%s1565_s6 + $0x28] sm:$0xff]  }
   0xc   :  { %1167 = vmatprep.subr.bf16.mxu0 %v1300_v7  ;;  %1205 = vmatprep.mubr.msk.bf16.mxu1 %vm63_vm0, %v1295_v2  ;;  %v1323_v62 = vld [vmem:[%s1565_s6 + $0x20] sm:$0xff]   ;;  %v1325_v0 = vld [vmem:[%s1565_s6 + $0x30] sm:$0xff]  }
   0xd   :  { %v1327_v2 = vld [vmem:[%s1565_s6 + $0x80] sm:$0xff]  }
   0xf   :  { %1168 = vmatpush3.bf16.msra.mxu0 %v1300_v7 }
  0x10   :  { %1169 = vmatprep.subr.bf16.mxu0 %v1301_v8 }
  0x13   :  { %1170 = vmatpush3.bf16.msra.mxu0 %v1301_v8 }
  0x14   :  { %1171 = vmatprep.subr.bf16.mxu0 %v1302_v9 }
  0x17   :  { %1172 = vmatpush3.bf16.msra.mxu0 %v1302_v9 }
  0x18   :  { %1177 = vmatprep.subr.bf16.mxu0 %v1303_v10 }
  0x1a   :  { %1174 = vmatmul.mubr.msk.bf16.vlgmr.msra.gmra.mrb[4].mxu0 %vm233_vm1, %v1294_v1  ;;  %v1326_v1 = vld [vmem:[%s1565_s6 + $0x38] sm:$0xff]  }
  0x1b   :  { %1178 = vmatpush3.bf16.msra.mxu0 %v1303_v10 }
  0x1c   :  { %1179 = vmatprep.subr.bf16.mxu0 %v1304_v11 }
  0x1f   :  { %1180 = vmatpush3.bf16.msra.mxu0 %v1304_v11 }
  0x20   :  { %1181 = vmatprep.subr.bf16.mxu0 %v1305_v12 }
  0x23   :  { %1182 = vmatpush3.bf16.msra.mxu0 %v1305_v12 }
  0x24   :  { %1183 = vmatprep.subr.bf16.mxu0 %v1306_v13 }
  0x27   :  { %1184 = vmatpush3.bf16.msra.mxu0 %v1306_v13  ;;  %v1328_v13 = vld [vmem:[%s1565_s6 + $0x88] sm:$0xff]  }
  0x28   :  { %1189 = vmatprep.subr.bf16.mxu0 %v1307_v14 }
  0xdd   :  { %v1155_v15 = vpop.f32.mrb[0].mxu0  ;;  %v1163_v16 = vpop.f32.mrb[0].mxu1 }
  0xde   :  { %v104_v17 = vpop.f32.mrb[1].mxu0  ;;  %v175_v18 = vpop.f32.mrb[1].mxu1 }
  0xdf   :  { %v1156_v19 = vpop.f32.mrb[2].mxu0  ;;  %v1164_v20 = vpop.f32.mrb[2].mxu1 }
  0xe0   :  { %v120_v21 = vpack.c.bf16 %v1156_v19, %v1155_v15  ;;  %v107_v22 = vpop.f32.mrb[3].mxu0  ;;  %v191_v23 = vpack.c.bf16 %v1164_v20, %v1163_v16  ;;  %v178_v24 = vpop.f32.mrb[3].mxu1  ;;  %v1329_v15 = vld [vmem:[%s1565_s6 + $0x90] sm:$0xff]  }
  0xe1   :  { %v119_v25 = vpack.c.bf16 %v107_v22, %v104_v17  ;;  %v190_v26 = vpack.c.bf16 %v178_v24, %v175_v18  ;;  %v1331_v22 = vld [vmem:[%s1565_s6 + $0xa0] sm:$0xff]   ;;  %v1333_v24 = vld [vmem:[%s1565_s6 + $0xb0] sm:$0xff]  }
  0xe3   :  { %1185 = vmatprep.mubr.msk.bf16.mxu0 %vm233_vm1, %v119_v25  ;;  %v1334_v25 = vld [vmem:[%s1565_s6 + $0xb8] sm:$0xff]  }
  0xe4   :  { %1186 = vmatmul.mubr.msk.bf16.vlgmr.msra.gmra.mrb[4].mxu0 %vm233_vm1, %v120_v21  ;;  %v1330_v21 = vld [vmem:[%s1565_s6 + $0x98] sm:$0xff]  }
  0xe5   :  { %1190 = vmatpush3.bf16.msra.mxu0 %v1307_v14  ;;  %1197 = vmatprep.mubr.msk.bf16.mxu0 %vm233_vm1, %v190_v26 }
  0xe6   :  { %1191 = vmatprep.subr.bf16.mxu0 %v1308_v27 }
  0xe9   :  { %1192 = vmatpush3.bf16.msra.mxu0 %v1308_v27  ;;  %v1083_v27 = vld [vmem:[%s1568_s7] ss:$0 sm:$0xff] }
  0xea   :  { %1193 = vmatprep.subr.bf16.mxu0 %v1309_v28 }
  0xed   :  { %1194 = vmatpush3.bf16.msra.mxu0 %v1309_v28 }
  0xee   :  { %1195 = vmatprep.subr.bf16.mxu0 %v1310_v29 }
  0xf1   :  { %1196 = vmatpush3.bf16.msra.mxu0 %v1310_v29 }
  0xf2   :  { %1217 = vmatprep.subr.bf16.mxu0 %v1311_v30 }
  0xf4   :  { %1198 = vmatmul.mubr.msk.bf16.vlgmr.msra.gmra.mrb[4].mxu0 %vm233_vm1, %v191_v23  ;;  %v1332_v23 = vld [vmem:[%s1565_s6 + $0xa8] sm:$0xff]  }
  0xf5   :  { %1218 = vmatpush3.bf16.msra.mxu0 %v1311_v30  ;;  %v1084_v30 = vld [vmem:[%s1569_s8] ss:$0 sm:$0xff] }
  0xf6   :  { %1219 = vmatprep.subr.bf16.mxu0 %v1312_v31 }
  0xf9   :  { %1220 = vmatpush3.bf16.msra.mxu0 %v1312_v31 }
  0xfa   :  { %1221 = vmatprep.subr.bf16.mxu0 %v1313_v32 }
  0xfd   :  { %1222 = vmatpush3.bf16.msra.mxu0 %v1313_v32 }
  0xfe   :  { %1223 = vmatprep.subr.bf16.mxu0 %v1314_v33 }
 0x101   :  { %1224 = vmatpush3.bf16.msra.mxu0 %v1314_v33 }
 0x102   :  { %1225 = vmatprep.subr.bf16.mxu0 %v1315_v34 }
 0x105   :  { %1226 = vmatpush3.bf16.msra.mxu0 %v1315_v34 }
 0x106   :  { %1227 = vmatprep.subr.bf16.mxu0 %v1316_v35 }
 0x109   :  { %1228 = vmatpush3.bf16.msra.mxu0 %v1316_v35 }
 0x10a   :  { %1229 = vmatprep.subr.bf16.mxu0 %v1317_v36 }
 0x10d   :  { %1230 = vmatpush3.bf16.msra.mxu0 %v1317_v36 }
 0x10e   :  { %1231 = vmatprep.subr.bf16.mxu0 %v1318_v37 }
 0x111   :  { %1232 = vmatpush3.bf16.msra.mxu0 %v1318_v37 }
 0x1c7   :  { %v1199_v39 = vpop.f32.mrb[4].mxu0 }
 0x1c8   :  { %v469_v41 = vadd.f32 %v1199_v39, %v1021_v38  ;;  %v441_v42 = vpop.f32.mrb[5].mxu0 }
 0x1c9   :  { %v467_v43 = vadd.f32 %v1021_v38, %v441_v42  ;;  %v1200_v44 = vpop.f32.mrb[6].mxu0 }
 0x1ca   :  { %v484_v45 = vmul.f32 %v1022_v40, %v469_v41  ;;  %v470_v46 = vadd.f32 %v1200_v44, %v1021_v38  ;;  %v444_v47 = vpop.f32.mrb[7].mxu0  ;;  %vm473_vm2 = vcmp.ge.f32.partialorder %v469_v41, 0.0 }
 0x1cb   :  { %v482_v48 = vmul.f32 %v1022_v40, %v467_v43  ;;  %v468_v49 = vadd.f32 %v1021_v38, %v444_v47  ;;  %vm471_vm3 = vcmp.ge.f32.partialorder %v467_v43, 0.0 }
 0x1cc   :  { %vm474_vm4 = vcmp.ge.f32.partialorder %v470_v46, 0.0  ;;  %v485_v50 = vmul.f32 %v1022_v40, %v470_v46  ;;  %v488_v52 = vsel %vm473_vm2, %v469_v41, %v484_v45 }
 0x1cd   :  { %vm472_vm5 = vcmp.ge.f32.partialorder %v468_v49, 0.0  ;;  %v483_v51 = vmul.f32 %v1022_v40, %v468_v49  ;;  %v486_v54 = vsel %vm471_vm3, %v467_v43, %v482_v48 }
 0x1ce   :  { %v489_v53 = vsel %vm474_vm4, %v470_v46, %v485_v50 }
 0x1cf   :  { %v491_v55 = vpack.c.bf16 %v489_v53, %v488_v52  ;;  %v487_v56 = vsel %vm472_vm5, %v468_v49, %v483_v51 }
 0x1d0   :  { %v490_v57 = vpack.c.bf16 %v487_v56, %v486_v54 }
 0x1d2   :  { %1201 = vmatprep.subr.bf16.mxu1 %v490_v57  ;;  %1233 = vmatprep.mubr.bf16.mxu0 %v490_v57 }
 0x1d3   :  { %1202 = vmatpush3.bf16.msra.mxu1 %v490_v57  ;;  %1234 = vmatmul.mubr.bf16.vlgmr.msra.gmra.mrb[8].mxu0 %v491_v55 }
 0x1d4   :  { %1203 = vmatprep.subr.bf16.mxu1 %v491_v55 }
 0x1d7   :  { %1204 = vmatpush3.bf16.msra.mxu1 %v491_v55 }
 0x1d8   :  { %1209 = vmatprep.subr.bf16.mxu1 %v490_v57 }
 0x1da   :  { %1206 = vmatmul.mubr.msk.bf16.vlgmr.msra.gmra.mrb[4].mxu1 %vm63_vm0, %v1398_v3 }
 0x1db   :  { %1210 = vmatpush3.bf16.msra.mxu1 %v490_v57  ;;  %1213 = vmatprep.mubr.msk.bf16.mxu1 %vm63_vm0, %v1403_v4 }
 0x1dc   :  { %1211 = vmatprep.subr.bf16.mxu1 %v491_v55 }
 0x1df   :  { %1212 = vmatpush3.bf16.msra.mxu1 %v491_v55 }
 0x1e0   :  { %1237 = vmatprep.subr.bf16.mxu1 %v1319_v58 }
 0x1e2   :  { %1214 = vmatmul.mubr.msk.bf16.vlgmr.msra.gmra.mrb[8].mxu1 %vm63_vm0, %v1408_v5 }
 0x1e3   :  { %1238 = vmatpush3.bf16.msra.mxu1 %v1319_v58 }
 0x1e4   :  { %1239 = vmatprep.subr.bf16.mxu1 %v1320_v59 }
 0x1e7   :  { %1240 = vmatpush3.bf16.msra.mxu1 %v1320_v59 }
 0x1e8   :  { %1241 = vmatprep.subr.bf16.mxu1 %v1321_v60 }
 0x1eb   :  { %1242 = vmatpush3.bf16.msra.mxu1 %v1321_v60 }
 0x1ec   :  { %1243 = vmatprep.subr.bf16.mxu1 %v1322_v61 }
 0x1ef   :  { %1244 = vmatpush3.bf16.msra.mxu1 %v1322_v61 }
 0x1f0   :  { %1245 = vmatprep.subr.bf16.mxu1 %v1323_v62 }
 0x1f3   :  { %1246 = vmatpush3.bf16.msra.mxu1 %v1323_v62 }
 0x1f4   :  { %1247 = vmatprep.subr.bf16.mxu1 %v1324_v63 }
 0x1f7   :  { %1248 = vmatpush3.bf16.msra.mxu1 %v1324_v63 }
 0x1f8   :  { %1249 = vmatprep.subr.bf16.mxu1 %v1325_v0 }
 0x1fb   :  { %1250 = vmatpush3.bf16.msra.mxu1 %v1325_v0 }
 0x1fc   :  { %1251 = vmatprep.subr.bf16.mxu1 %v1326_v1 }
 0x1ff   :  { %1252 = vmatpush3.bf16.msra.mxu1 %v1326_v1 }
 0x200   :  { %1257 = vmatprep.subr.bf16.mxu1 %v1327_v2 }
 0x2a6   :  { %v1235_v3 = vpop.f32.mrb[8].mxu0 }
 0x2a7   :  { %v709_v4 = vpop.f32.mrb[9].mxu0 }
 0x2a8   :  { %v1236_v5 = vpop.f32.mrb[10].mxu0 }
 0x2a9   :  { %v712_v6 = vpop.f32.mrb[11].mxu0 }
 0x2ad   :  { %v1207_v7 = vpop.f32.mrb[4].mxu1 }
 0x2ae   :  { %v526_v8 = vpop.f32.mrb[5].mxu1 }
 0x2af   :  { %v1208_v9 = vpop.f32.mrb[6].mxu1 }
 0x2b0   :  { %v542_v10 = vpack.c.bf16 %v1208_v9, %v1207_v7  ;;  %v529_v11 = vpop.f32.mrb[7].mxu1 }
 0x2b1   :  { %v541_v12 = vpack.c.bf16 %v529_v11, %v526_v8 }
 0x2b3   :  { %1253 = vmatprep.mubr.bf16.mxu1 %v541_v12 }
 0x2b4   :  { %1254 = vmatmul.mubr.bf16.vlgmr.msra.gmra.mrb[12].mxu1 %v542_v10 }
 0x2b5   :  { %1258 = vmatpush3.bf16.msra.mxu1 %v1327_v2  ;;  %v1215_v14 = vpop.f32.mrb[8].mxu1 }
 0x2b6   :  { %1259 = vmatprep.subr.bf16.mxu1 %v1328_v13  ;;  %v577_v16 = vpop.f32.mrb[9].mxu1 }
 0x2b7   :  { %v1216_v17 = vpop.f32.mrb[10].mxu1 }
 0x2b8   :  { %v593_v18 = vpack.c.bf16 %v1216_v17, %v1215_v14  ;;  %v580_v19 = vpop.f32.mrb[11].mxu1 }
 0x2b9   :  { %1260 = vmatpush3.bf16.msra.mxu1 %v1328_v13  ;;  %v592_v20 = vpack.c.bf16 %v580_v19, %v577_v16 }
 0x2ba   :  { %1261 = vmatprep.subr.bf16.mxu1 %v1329_v15 }
 0x2bb   :  { %1273 = vmatprep.mubr.bf16.mxu1 %v592_v20 }
 0x2bd   :  { %1262 = vmatpush3.bf16.msra.mxu1 %v1329_v15 }
 0x2be   :  { %1263 = vmatprep.subr.bf16.mxu1 %v1330_v21 }
 0x2c1   :  { %1264 = vmatpush3.bf16.msra.mxu1 %v1330_v21 }
 0x2c2   :  { %1265 = vmatprep.subr.bf16.mxu1 %v1331_v22 }
 0x2c5   :  { %1266 = vmatpush3.bf16.msra.mxu1 %v1331_v22 }
 0x2c6   :  { %1267 = vmatprep.subr.bf16.mxu1 %v1332_v23 }
 0x2c9   :  { %1268 = vmatpush3.bf16.msra.mxu1 %v1332_v23 }
 0x2ca   :  { %1269 = vmatprep.subr.bf16.mxu1 %v1333_v24 }
 0x2cd   :  { %1270 = vmatpush3.bf16.msra.mxu1 %v1333_v24 }
 0x2ce   :  { %1271 = vmatprep.subr.bf16.mxu1 %v1334_v25 }
 0x2d1   :  { %1272 = vmatpush3.bf16.msra.mxu1 %v1334_v25 }
 0x2d4   :  { %1274 = vmatmul.mubr.bf16.vlgmr.msra.gmra.mrb[12].mxu1 %v593_v18 }
 0x3a7   :  { %v1275_v26 = vpop.f32.mrb[12].mxu1 }
 0x3a8   :  { %v1277_v28 = vadd.f32 %v1275_v26, %v1235_v3  ;;  %v920_v29 = vpop.f32.mrb[13].mxu1 }
 0x3a9   :  { %v1278_v31 = vadd.f32 %v920_v29, %v709_v4  ;;  %v1276_v32 = vpop.f32.mrb[14].mxu1 }
 0x3aa   :  { %v948_v33 = vadd.f32 %v1277_v28, %v1083_v27  ;;  %v1279_v34 = vadd.f32 %v1276_v32, %v1236_v5  ;;  %v923_v35 = vpop.f32.mrb[15].mxu1 }
 0x3ab   :  { %v946_v36 = vadd.f32 %v1278_v31, %v1083_v27  ;;  %v1280_v37 = vadd.f32 %v923_v35, %v712_v6 }
 0x3ac   :  { %vm952_vm6 = vcmp.ge.f32.partialorder %v948_v33, 0.0  ;;  %v963_v38 = vmul.f32 %v1084_v30, %v948_v33  ;;  %v949_v39 = vadd.f32 %v1279_v34, %v1083_v27 }
 0x3ad   :  { %vm950_vm7 = vcmp.ge.f32.partialorder %v946_v36, 0.0  ;;  %v961_v40 = vmul.f32 %v1084_v30, %v946_v36  ;;  %v947_v41 = vadd.f32 %v1280_v37, %v1083_v27 }
 0x3ae   :  { %v967_v42 = vsel %vm952_vm6, %v948_v33, %v963_v38  ;;  %vm953_vm8 = vcmp.ge.f32.partialorder %v949_v39, 0.0  ;;  %v964_v43 = vmul.f32 %v1084_v30, %v949_v39 }
 0x3af   :  { %971 = vst [vmem:[%s1570_s9 + $0x10] sm:$0xff] %v967_v42  ;;  %v965_v44 = vsel %vm950_vm7, %v946_v36, %v961_v40  ;;  %vm951_vm9 = vcmp.ge.f32.partialorder %v947_v41, 0.0  ;;  %v962_v45 = vmul.f32 %v1084_v30, %v947_v41 }
 0x3b0   :  { %969 = vst [vmem:[%s1570_s9] sm:$0xff] %v965_v44  ;;  %v968_v46 = vsel %vm953_vm8, %v949_v39, %v964_v43 }
 0x3b1   :  { %972 = vst [vmem:[%s1570_s9 + $0x18] sm:$0xff] %v968_v46  ;;  %v966_v47 = vsel %vm951_vm9, %v947_v41, %v962_v45 }
 0x3b2   :  { %970 = vst [vmem:[%s1570_s9 + $0x8] sm:$0xff] %v966_v47 }

</bundles_post_ra>
